<compile_context>
chip_gen: v5e
topology: v5e:2x2
jax: 0.10.0
libtpu: 0.0.40
codegen_flags: <defaults>
</compile_context>

<pallas_src>
import jax
import jax.numpy as jnp
from jax.experimental import pallas as pl
from jax.experimental.pallas import tpu as pltpu


H1, H2 = 128, 64          # hidden sizes fixed by the PyTorch module
MAX_TILE_B = 2048         # per-step footprint stays single-digit MiB (fits v5e's
                          # 16 MiB scoped-VMEM default with double buffering)


def _round_up(x, m):
    return -(-x // m) * m


def _pick_tile_b(batch, max_tile=MAX_TILE_B):
    """Batch tile: big enough to amortize per-step pipeline overhead, >= 2 grid
    steps when the batch allows it (2-TC sharding on v7x), and a multiple of 128
    (hence 8, the sublane constraint) unless a single block covers the batch."""
    if batch <= 256:
        return batch                                   # one block == full dim (legal)
    half = _round_up(-(-batch // 2), 128)              # round_up(cdiv(B,2), 128)
    return min(half, max_tile)


def _mlp_kernel(x_ref, w1_ref, b1_ref, w2_ref, b2_ref, w3_ref, b3_ref, o_ref):
    # In-kernel bf16 cast of x (VPU); matmuls accumulate in f32 on the MXU.
    x = x_ref[...].astype(jnp.bfloat16)
    # fc1 + relu   (dropout = identity in eval mode)
    h1 = jnp.dot(x, w1_ref[...], preferred_element_type=jnp.float32)
    h1 = jnp.maximum(h1 + b1_ref[...], 0.0)
    # fc2 + relu
    h2 = jnp.dot(h1.astype(jnp.bfloat16), w2_ref[...],
                 preferred_element_type=jnp.float32)
    h2 = jnp.maximum(h2 + b2_ref[...], 0.0)
    # fc3 (no activation)
    h3 = jnp.dot(h2.astype(jnp.bfloat16), w3_ref[...],
                 preferred_element_type=jnp.float32)
    o_ref[...] = (h3 + b3_ref[...]).astype(o_ref.dtype)


def prepare_params(params):
    """One-time parameter prep (hoisted out of the forward): bf16 MXU operands,
    f32 biases.  Cache the result and reuse it across forward calls."""
    return dict(
        w1=params["w1"].astype(jnp.bfloat16),
        w2=params["w2"].astype(jnp.bfloat16),
        w3=params["w3"].astype(jnp.bfloat16),
        b1=params["b1"].astype(jnp.float32),
        b2=params["b2"].astype(jnp.float32),
        b3=params["b3"].astype(jnp.float32),
    )


def net_forward(x, prepared, *, tile_b=None):
    """Fused Net forward pass (eval mode).

    x: (B, input_size) float32
    prepared: output of prepare_params(): w1 (in,128) bf16, b1 (1,128) f32,
              w2 (128,64) bf16, b2 (1,64) f32, w3 (64,out) bf16, b3 (1,out) f32
    Returns (B, out) float32.
    """
    B, in_size = x.shape
    out_size = prepared["w3"].shape[1]
    if tile_b is None:
        tile_b = _pick_tile_b(B)
    grid = (pl.cdiv(B, tile_b),)   # ragged last tile: OOB rows only feed masked-off outputs

    def resident(shape):   # weights/biases: same block every step -> DMA'd once, VMEM-resident
        return pl.BlockSpec(shape, lambda i: (0, 0))

    flops = 2 * B * (in_size * H1 + H1 * H2 + H2 * out_size)
    bytes_accessed = (
        x.size * 4                                                            # x (f32)
        + (prepared["w1"].size + prepared["w2"].size + prepared["w3"].size) * 2   # weights (bf16)
        + (prepared["b1"].size + prepared["b2"].size + prepared["b3"].size) * 4   # biases (f32)
        + B * out_size * 4                                                    # output (f32)
    )

    return pl.pallas_call(
        _mlp_kernel,
        out_shape=jax.ShapeDtypeStruct((B, out_size), jnp.float32),
        grid=grid,
        in_specs=[
            pl.BlockSpec((tile_b, in_size), lambda i: (i, 0)),   # x: tiled over batch
            resident((in_size, H1)),                             # w1
            resident((1, H1)),                                   # b1
            resident((H1, H2)),                                  # w2
            resident((1, H2)),                                   # b2
            resident((H2, out_size)),                            # w3
            resident((1, out_size)),                             # b3
        ],
        out_specs=pl.BlockSpec((tile_b, out_size), lambda i: (i, 0)),
        compiler_params=pltpu.CompilerParams(
            dimension_semantics=("parallel",),   # 2-TC sharding on v7x; no-op on v5e/v6e
        ),
        cost_estimate=pl.CostEstimate(
            flops=flops, transcendentals=0, bytes_accessed=bytes_accessed),
    )(x, prepared["w1"], prepared["b1"], prepared["w2"], prepared["b2"],
      prepared["w3"], prepared["b3"])


def init_params(key, input_size, output_size):
    """Deterministic init matching the PyTorch module's parameter shapes.

    nn.Linear(in, out) stores weight (out, in); we keep the transposed (in, out)
    layout so the kernel does x @ W without an in-kernel transpose.
    """
    ks = jax.random.split(key, 6)

    def linear(kw, kb, fan_in, fan_out):
        bound = 1.0 / jnp.sqrt(fan_in)
        w = jax.random.uniform(kw, (fan_in, fan_out), jnp.float32, -bound, bound)
        b = jax.random.uniform(kb, (1, fan_out), jnp.float32, -bound, bound)
        return w, b

    w1, b1 = linear(ks[0], ks[1], input_size, H1)
    w2, b2 = linear(ks[2], ks[3], H1, H2)
    w3, b3 = linear(ks[4], ks[5], H2, output_size)
    return dict(w1=w1, b1=b1, w2=w2, b2=b2, w3=w3, b3=b3)


def _reference(x, p):
    """Pure-JAX reference with the same bf16-operand / f32-accumulation recipe."""
    w1 = p["w1"].astype(jnp.bfloat16)
    w2 = p["w2"].astype(jnp.bfloat16)
    w3 = p["w3"].astype(jnp.bfloat16)
    h = jnp.dot(x.astype(jnp.bfloat16), w1, preferred_element_type=jnp.float32)
    h = jnp.maximum(h + p["b1"], 0.0)
    h = jnp.dot(h.astype(jnp.bfloat16), w2, preferred_element_type=jnp.float32)
    h = jnp.maximum(h + p["b2"], 0.0)
    h = jnp.dot(h.astype(jnp.bfloat16), w3, preferred_element_type=jnp.float32)
    return h + p["b3"]


if __name__ == "__main__":
    input_size, output_size, batch = 32, 16, 8
    key = jax.random.PRNGKey(0)
    kx, kp = jax.random.split(key)
    x = jax.random.normal(kx, (batch, input_size), jnp.float32)

    params = init_params(kp, input_size, output_size)
    prepared = prepare_params(params)          # one-time bf16 cast, reused per call

    out = jax.block_until_ready(net_forward(x, prepared))

    ref = _reference(x, params)
    assert out.shape == (batch, output_size)
    assert jnp.allclose(out, ref, atol=2e-3, rtol=2e-3), \
        float(jnp.max(jnp.abs(out - ref)))
    print("KERNEL_OK")
</pallas_src>

<mosaic_0001>
module attributes {stable_mosaic.version = 11 : i64} {
  func.func @_mlp_kernel(%arg0: i32, %arg1: memref<8x32xf32, #tpu.memory_space<vmem>>, %arg2: memref<32x128xbf16, #tpu.memory_space<vmem>>, %arg3: memref<1x128xf32, #tpu.memory_space<vmem>>, %arg4: memref<128x64xbf16, #tpu.memory_space<vmem>>, %arg5: memref<1x64xf32, #tpu.memory_space<vmem>>, %arg6: memref<64x16xbf16, #tpu.memory_space<vmem>>, %arg7: memref<1x16xf32, #tpu.memory_space<vmem>>, %arg8: memref<8x16xf32, #tpu.memory_space<vmem>>) attributes {dimension_semantics = [#tpu.dimension_semantics<parallel>], iteration_bounds = array<i64: 1>, scalar_prefetch = 0 : i64, scratch_operands = 0 : i64, tpu.core_type = #tpu.core_type<tc>, window_params = [{transform_indices = @transform_0, window_bounds = array<i64: 8, 32>}, {pipeline_mode = #tpu.pipeline_mode<synchronous>, transform_indices = @transform_1, window_bounds = array<i64: 32, 128>}, {pipeline_mode = #tpu.pipeline_mode<synchronous>, transform_indices = @transform_2, window_bounds = array<i64: 1, 128>}, {pipeline_mode = #tpu.pipeline_mode<synchronous>, transform_indices = @transform_3, window_bounds = array<i64: 128, 64>}, {pipeline_mode = #tpu.pipeline_mode<synchronous>, transform_indices = @transform_4, window_bounds = array<i64: 1, 64>}, {pipeline_mode = #tpu.pipeline_mode<synchronous>, transform_indices = @transform_5, window_bounds = array<i64: 64, 16>}, {pipeline_mode = #tpu.pipeline_mode<synchronous>, transform_indices = @transform_6, window_bounds = array<i64: 1, 16>}, {transform_indices = @transform_7, window_bounds = array<i64: 8, 16>}]} {
    %c0 = arith.constant 0 : index
    %c0_0 = arith.constant 0 : index
    %0 = vector.load %arg1[%c0, %c0_0] : memref<8x32xf32, #tpu.memory_space<vmem>>, vector<8x32xf32>
    %1 = arith.truncf %0 : vector<8x32xf32> to vector<8x32xbf16>
    %c0_1 = arith.constant 0 : index
    %c0_2 = arith.constant 0 : index
    %2 = vector.load %arg2[%c0_1, %c0_2] : memref<32x128xbf16, #tpu.memory_space<vmem>>, vector<32x128xbf16>
    %cst = arith.constant dense<0.000000e+00> : vector<8x128xf32>
    %3 = tpu.matmul %1, %2, %cst {dimension_numbers = #tpu.dot_dimension_numbers<[1], [0], [0], [1], [0, 0, 1, 1], [], []>} : vector<8x32xbf16>, vector<32x128xbf16>, vector<8x128xf32> -> vector<8x128xf32>
    %c0_3 = arith.constant 0 : index
    %c0_4 = arith.constant 0 : index
    %4 = vector.load %arg3[%c0_3, %c0_4] : memref<1x128xf32, #tpu.memory_space<vmem>>, vector<1x128xf32>
    %5 = vector.broadcast %4 : vector<1x128xf32> to vector<8x128xf32>
    %6 = arith.addf %3, %5 : vector<8x128xf32>
    %cst_5 = arith.constant 0.000000e+00 : f32
    %7 = vector.broadcast %cst_5 : f32 to vector<8x128xf32>
    %8 = arith.maximumf %6, %7 : vector<8x128xf32>
    %9 = arith.truncf %8 : vector<8x128xf32> to vector<8x128xbf16>
    %c0_6 = arith.constant 0 : index
    %c0_7 = arith.constant 0 : index
    %10 = vector.load %arg4[%c0_6, %c0_7] : memref<128x64xbf16, #tpu.memory_space<vmem>>, vector<128x64xbf16>
    %cst_8 = arith.constant dense<0.000000e+00> : vector<8x64xf32>
    %11 = tpu.matmul %9, %10, %cst_8 {dimension_numbers = #tpu.dot_dimension_numbers<[1], [0], [0], [1], [0, 0, 1, 1], [], []>} : vector<8x128xbf16>, vector<128x64xbf16>, vector<8x64xf32> -> vector<8x64xf32>
    %c0_9 = arith.constant 0 : index
    %c0_10 = arith.constant 0 : index
    %12 = vector.load %arg5[%c0_9, %c0_10] : memref<1x64xf32, #tpu.memory_space<vmem>>, vector<1x64xf32>
    %13 = vector.broadcast %12 : vector<1x64xf32> to vector<8x64xf32>
    %14 = arith.addf %11, %13 : vector<8x64xf32>
    %cst_11 = arith.constant 0.000000e+00 : f32
    %15 = vector.broadcast %cst_11 : f32 to vector<8x64xf32>
    %16 = arith.maximumf %14, %15 : vector<8x64xf32>
    %17 = arith.truncf %16 : vector<8x64xf32> to vector<8x64xbf16>
    %c0_12 = arith.constant 0 : index
    %c0_13 = arith.constant 0 : index
    %18 = vector.load %arg6[%c0_12, %c0_13] : memref<64x16xbf16, #tpu.memory_space<vmem>>, vector<64x16xbf16>
    %cst_14 = arith.constant dense<0.000000e+00> : vector<8x16xf32>
    %19 = tpu.matmul %17, %18, %cst_14 {dimension_numbers = #tpu.dot_dimension_numbers<[1], [0], [0], [1], [0, 0, 1, 1], [], []>} : vector<8x64xbf16>, vector<64x16xbf16>, vector<8x16xf32> -> vector<8x16xf32>
    %c0_15 = arith.constant 0 : index
    %c0_16 = arith.constant 0 : index
    %20 = vector.load %arg7[%c0_15, %c0_16] : memref<1x16xf32, #tpu.memory_space<vmem>>, vector<1x16xf32>
    %21 = vector.broadcast %20 : vector<1x16xf32> to vector<8x16xf32>
    %22 = arith.addf %19, %21 : vector<8x16xf32>
    %c0_17 = arith.constant 0 : index
    %c0_18 = arith.constant 0 : index
    %23 = vector.load %arg8[%c0_17, %c0_18] : memref<8x16xf32, #tpu.memory_space<vmem>>, vector<8x16xf32>
    tpu.vector_store %arg8[%c0_17, %c0_18], %22 {strides = array<i32>} : memref<8x16xf32, #tpu.memory_space<vmem>>, vector<8x16xf32>,
    return
  }
  func.func @transform_0(%arg0: i32) -> (i32, i32) {
    %c0_i32 = arith.constant 0 : i32
    %c0_i32_0 = arith.constant 0 : i32
    return %arg0, %c0_i32 : i32, i32
  }
  func.func @transform_1(%arg0: i32) -> (i32, i32) {
    %c0_i32 = arith.constant 0 : i32
    %c0_i32_0 = arith.constant 0 : i32
    %c0_i32_1 = arith.constant 0 : i32
    return %c0_i32, %c0_i32_0 : i32, i32
  }
  func.func @transform_2(%arg0: i32) -> (i32, i32) {
    %c0_i32 = arith.constant 0 : i32
    %c0_i32_0 = arith.constant 0 : i32
    %c0_i32_1 = arith.constant 0 : i32
    return %c0_i32, %c0_i32_0 : i32, i32
  }
  func.func @transform_3(%arg0: i32) -> (i32, i32) {
    %c0_i32 = arith.constant 0 : i32
    %c0_i32_0 = arith.constant 0 : i32
    %c0_i32_1 = arith.constant 0 : i32
    return %c0_i32, %c0_i32_0 : i32, i32
  }
  func.func @transform_4(%arg0: i32) -> (i32, i32) {
    %c0_i32 = arith.constant 0 : i32
    %c0_i32_0 = arith.constant 0 : i32
    %c0_i32_1 = arith.constant 0 : i32
    return %c0_i32, %c0_i32_0 : i32, i32
  }
  func.func @transform_5(%arg0: i32) -> (i32, i32) {
    %c0_i32 = arith.constant 0 : i32
    %c0_i32_0 = arith.constant 0 : i32
    %c0_i32_1 = arith.constant 0 : i32
    return %c0_i32, %c0_i32_0 : i32, i32
  }
  func.func @transform_6(%arg0: i32) -> (i32, i32) {
    %c0_i32 = arith.constant 0 : i32
    %c0_i32_0 = arith.constant 0 : i32
    %c0_i32_1 = arith.constant 0 : i32
    return %c0_i32, %c0_i32_0 : i32, i32
  }
  func.func @transform_7(%arg0: i32) -> (i32, i32) {
    %c0_i32 = arith.constant 0 : i32
    %c0_i32_0 = arith.constant 0 : i32
    return %arg0, %c0_i32 : i32, i32
  }
}

</mosaic_0001>

<bundles_post_ra>
// kernel: tpu_custom_call.1
= control target key start
LH: loop header
LB: loop body
LE: loop exit
PB: predicated region body
PF: predicated region fallthrough
CT: control target
= control target key end

     0   :  { %s423_s0 = inlined_call_operand.vmem [shape: f32[8,32], index: 0, kind: input, shape index: {}]   ;;  %s424_s1 = inlined_call_operand.vmem [shape: bf16[32,128], index: 1, kind: input, shape index: {}]   ;;  %s425_s2 = inlined_call_operand.vmem [shape: f32[1,128], index: 2, kind: input, shape index: {}]   ;;  %s426_s3 = inlined_call_operand.vmem [shape: bf16[128,64], index: 3, kind: input, shape index: {}]   ;;  %s427_s4 = inlined_call_operand.vmem [shape: f32[1,64], index: 4, kind: input, shape index: {}]   ;;  %s428_s5 = inlined_call_operand.vmem [shape: bf16[64,16], index: 5, kind: input, shape index: {}]   ;;  %s429_s6 = inlined_call_operand.vmem [shape: f32[1,16], index: 6, kind: input, shape index: {}]   ;;  %s430_s7 = inlined_call_operand.hbm [shape: f32[8,16], index: 7, kind: output, shape index: {}]  }
   0x1   :  { %v282_v0 = vld [vmem:[%s424_s1 + $0x8] sm:$0xff]  ;;  %v290_v1 = vld [vmem:[%s426_s3 + $0x38] sm:$0xff]  ;;  %v281_v2 = vld [vmem:[%s424_s1] sm:$0xff] }
   0x2   :  { %60 = vmatpush.bf16.msra.mxu0 %v282_v0  ;;  %v28_v3 = vld [vmem:[%s423_s0] sm:$0xff]  ;;  %137 = vmatpush.bf16.msra.mxu1 %v290_v1  ;;  %v289_v4 = vld [vmem:[%s426_s3 + $0x30] sm:$0xff] }
   0x3   :  { %12 = vsyncpa [#allocation3], 0  ;;  %v29_v5 = vpack.c.bf16 %v28_v3, %v28_v3  ;;  %vm50_vm0 = vcmask 261120   ;;  %v288_v6 = vld [vmem:[%s426_s3 + $0x28] sm:$0xff]  ;;  %v287_v7 = vld [vmem:[%s426_s3 + $0x20] sm:$0xff]  ;;  %vm188_vm1 = vcmask 523264  }
   0x4   :  { %v286_v8 = vld [vmem:[%s426_s3 + $0x18] sm:$0xff]  ;;  %v285_v9 = vld [vmem:[%s426_s3 + $0x10] sm:$0xff]  ;;  %v284_v10 = vld [vmem:[%s426_s3 + $0x8] sm:$0xff]  ;;  %s325_s10 = smov [#allocation2]   ;;  %s214_s1 = sshll.u32 %s430_s7, 4  ;;  %vm205_vm2 = vcmask 130048   ;;  %s215_s1 = int_to_ptr.hbm [resolvable:$true] %s214_s1 }
   0x5   :  { %v283_v11 = vld [vmem:[%s426_s3] sm:$0xff]  ;;  %v294_v12 = vld [vmem:[%s428_s5 + $0x18] sm:$0xff]  ;;  %v293_v13 = vld [vmem:[%s428_s5 + $0x10] sm:$0xff]  ;;  %s212_s11 = sshll.u32 %s325_s10, 4  ;;  %s213_s11 = int_to_ptr.vmem [resolvable:$true] %s212_s11 }
   0x6   :  { %61 = vmatpush.bf16.msra.mxu0 %v281_v2  ;;  %138 = vmatpush.bf16.msra.mxu1 %v289_v4  ;;  %v296_v14 = vld [vmem:[%s425_s2] ss:$0 sm:$0xff]  ;;  %v292_v20 = vld [vmem:[%s428_s5 + $0x8] sm:$0xff] }
   0x7   :  { %196 = vmatpush.bf16.msra.mxu2 %v294_v12  ;;  %v291_v21 = vld [vmem:[%s428_s5] sm:$0xff] }
   0x8   :  { %v297_v22 = vld [vmem:[%s427_s4] ss:$0 sm:$0xff] }
   0x9   :  { %231 = vmatmul.msk.bf16.vlgmr.msra.gmra.mxu0 %vm50_vm0, %v29_v5  ;;  %v298_v28 = vld [vmem:[%s429_s6] ss:$0 sm:$0xff] }
   0xa   :  { %139 = vmatpush.bf16.msra.mxu1 %v288_v6 }
   0xb   :  { %197 = vmatpush.bf16.msra.mxu2 %v293_v13 }
   0xe   :  { %140 = vmatpush.bf16.msra.mxu1 %v287_v7 }
   0xf   :  { %198 = vmatpush.bf16.msra.mxu2 %v292_v20 }
  0x12   :  { %141 = vmatpush.bf16.msra.mxu1 %v286_v8 }
  0x13   :  { %199 = vmatpush.bf16.msra.mxu2 %v291_v21 }
  0x16   :  { %142 = vmatpush.bf16.msra.mxu1 %v285_v9 }
  0x1a   :  { %143 = vmatpush.bf16.msra.mxu1 %v284_v10 }
  0x1e   :  { %144 = vmatpush.bf16.msra.mxu1 %v283_v11 }
  0x86   :  { %v63_v15 = vpop.f32.mrf.mxu0 }
  0x87   :  { %v64_v16 = vadd.f32 %v296_v14, %v63_v15 }
  0x89   :  { %v67_v17 = vmax.f32 %v64_v16, 0.0 }
  0x8b   :  { %v68_v18 = vpack.c.bf16 %v67_v17, %v67_v17 }
  0x8d   :  { %145 = vmatmul.bf16.vlgmr.msra.gmra.mxu1 %v68_v18 }
  0x8e   :  { %v65_v19 = vpop.f32.mrf.mxu0 }
 0x10a   :  { %v146_v23 = vpop.f32.mrf.mxu1 }
 0x10b   :  { %v147_v24 = vadd.f32 %v297_v22, %v146_v23 }
 0x10d   :  { %v150_v25 = vmax.f32 %v147_v24, 0.0 }
 0x10f   :  { %v151_v26 = vpack.c.bf16 %v150_v25, %v150_v25 }
 0x111   :  { %280 = vmatmul.msk.bf16.vlgmr.msra.gmra.mxu2 %vm188_vm1, %v151_v26 }
 0x112   :  { %v148_v27 = vpop.f32.mrf.mxu1 }
 0x194   :  { %v201_v29 = vpop.f32.mrf.mxu2 }
 0x195   :  { %v202_v30 = vadd.f32 %v298_v28, %v201_v29 }
 0x197   :  { %206 = vst.msk [vmem:[#allocation2] sm:$0xff] %vm205_vm2, %v202_v30 }
 0x198   :  { %217 = dma.vmem_to_hbm [thread:$0]  %s213_s11, 128, %s215_s1, [#allocation3]  }
 0x19c   :  { %v203_v31 = vpop.f32.mrf.mxu2 }
 0x19d   :  { %323 = dma.done.wait [#allocation3], 128  }
 0x19e   :  { %324 = vsyncadd [#allocation3], 4294967168 }
 0x19f   :  { %222 = vsyncpa [#allocation3], 1 }

</bundles_post_ra>
